<compile_context>
chip_gen: v5e
topology: v5e:2x2
jax: 0.10.0
libtpu: 0.0.40
codegen_flags: <defaults>
</compile_context>

<pallas_src>
import functools

import jax
import jax.numpy as jnp
import numpy as np
from jax.experimental import pallas as pl
from jax.experimental.pallas import tpu as pltpu

_BN_EPS = 1e-5


# ----------------------------------------------------------------------------
# Fused BasicBlock kernel factory
# ----------------------------------------------------------------------------
def _make_basic_block_kernel(*, P, Cin, Cout, Ho, Wo, Mb, stride,
                             has_projection, halo):
    # Static tap table for conv1: (phase index, dh, dw) per (kh, kw).
    taps1 = []
    if stride == 1:
        for kh in range(3):
            for kw in range(3):
                taps1.append((0, kh - 1, kw - 1))
    else:  # stride 2 via 4 space-to-depth phases; phase index = 2*row_parity + col_parity
        def _p(k):
            if k == 0:
                return 1, -1      # source parity 1, shifted back one phase-row/col
            if k == 1:
                return 0, 0
            return 1, 0
        for kh in range(3):
            for kw in range(3):
                pr, dh = _p(kh)
                pc, dw = _p(kw)
                taps1.append((pr * 2 + pc, dh, dw))

    def kernel(*refs):
        if has_projection:
            (xph_ref, hh_ref, ww_ref, w1_ref, s1_ref, b1_ref,
             w2_ref, s2_ref, b2_ref, ws_ref, ss_ref, bs_ref,
             o_ref, halo1_ref, p1_ref, halo2_ref, p2_ref) = refs
        else:
            (xph_ref, hh_ref, ww_ref, w1_ref, s1_ref, b1_ref,
             w2_ref, s2_ref, b2_ref,
             o_ref, halo1_ref, p1_ref, halo2_ref, p2_ref) = refs

        hh = hh_ref[...]          # (1, Mb) int32: row index within image
        ww = ww_ref[...]          # (1, Mb) int32: col index within image

        def tap_mask(dh, dw):
            conds = []
            if dh < 0:
                conds.append(hh >= -dh)
            if dh > 0:
                conds.append(hh < Ho - dh)
            if dw < 0:
                conds.append(ww >= -dw)
            if dw > 0:
                conds.append(ww < Wo - dw)
            if not conds:
                return None
            m = conds[0]
            for c in conds[1:]:
                m = jnp.logical_and(m, c)
            return m

        def masked(tap, dh, dw):
            m = tap_mask(dh, dw)
            if m is None:
                return tap
            # (1, Mb) mask broadcasts over the channel (sublane) dim; select (not
            # multiply) so uninitialized halo lanes can never propagate NaN/Inf.
            return jnp.where(m, tap, jnp.zeros_like(tap))

        # ---- conv1 patches: stage phases into the lane-haloed scratch, slice taps.
        for p in range(P):
            halo1_ref[p, :, pl.ds(halo, Mb)] = xph_ref[p]
        for t, (ph, dh, dw) in enumerate(taps1):
            tap = halo1_ref[ph, :, pl.ds(halo + dh * Wo + dw, Mb)]
            p1_ref[pl.ds(t * Cin, Cin), :] = masked(tap, dh, dw)

        # ---- conv1 + bn1 + relu: single K = 9*Cin contraction, f32 accumulation.
        y1 = jnp.dot(w1_ref[...], p1_ref[...],
                     preferred_element_type=jnp.float32)
        h1 = jnp.maximum(y1 * s1_ref[...] + b1_ref[...], 0.0)   # (Cout, Mb) f32

        # ---- conv2 patches built from the VMEM-resident h1 (never touches HBM).
        halo2_ref[:, pl.ds(halo, Mb)] = h1.astype(halo2_ref.dtype)
        for t in range(9):
            kh, kw = divmod(t, 3)
            dh, dw = kh - 1, kw - 1
            tap = halo2_ref[:, pl.ds(halo + dh * Wo + dw, Mb)]
            p2_ref[pl.ds(t * Cout, Cout), :] = masked(tap, dh, dw)

        # ---- conv2 + bn2: single K = 9*Cout contraction.
        y2 = jnp.dot(w2_ref[...], p2_ref[...],
                     preferred_element_type=jnp.float32)
        y2 = y2 * s2_ref[...] + b2_ref[...]

        # ---- shortcut (1x1 projection on phase (0,0), or identity), f32 add.
        if has_projection:
            ysc = jnp.dot(ws_ref[...], xph_ref[0],
                          preferred_element_type=jnp.float32)
            ysc = ysc * ss_ref[...] + bs_ref[...]
        else:
            ysc = xph_ref[0].astype(jnp.float32)

        o_ref[...] = jnp.maximum(y2 + ysc, 0.0).astype(o_ref.dtype)

    return kernel


# ----------------------------------------------------------------------------
# Wrapper-side helpers
# ----------------------------------------------------------------------------
def _bn_scale_bias(bn):
    gamma, beta, mean, var = bn
    inv = jax.lax.rsqrt(var.astype(jnp.float32) + _BN_EPS)
    scale = gamma.astype(jnp.float32) * inv
    bias = beta.astype(jnp.float32) - mean.astype(jnp.float32) * scale
    return scale.reshape(-1, 1), bias.reshape(-1, 1)


def _conv_weight_matrix(w_oihw):
    """(Cout, Cin, KH, KW) -> (Cout, KH*KW*Cin), matching the in-kernel tap order."""
    Cout, Cin, KH, KW = w_oihw.shape
    return jnp.transpose(w_oihw, (0, 2, 3, 1)).reshape(
        Cout, KH * KW * Cin).astype(jnp.bfloat16)


def _choose_batch_tile(N, lanes_per_image, min_lanes=1024):
    """Work-aware grid split: only tile the batch when each step keeps >=
    min_lanes of lane-dense work (and a 128-aligned block); otherwise one step."""
    for tn in range(1, N):
        lanes = tn * lanes_per_image
        if N % tn == 0 and lanes >= min_lanes and lanes % 128 == 0:
            return tn
    return N


# ----------------------------------------------------------------------------
# BasicBlock forward, CNHW layout (use this when chaining blocks)
# ----------------------------------------------------------------------------
def basic_block_forward_cnhw(x_cnhw, params, *, stride):
    Cin, N, H, W = x_cnhw.shape
    Cout = params["w1"].shape[0]
    has_projection = (stride != 1) or (Cin != Cout)
    assert stride in (1, 2), "CIFAR BasicBlock only uses stride 1 or 2"

    if stride == 2:
        assert H % 2 == 0 and W % 2 == 0
        Ho, Wo, P = H // 2, W // 2, 4
    else:
        Ho, Wo, P = H, W, 1

    M = N * Ho * Wo
    x_b = x_cnhw.astype(jnp.bfloat16)
    if stride == 2:
        # Space-to-depth phase split: exactly 1x the activation bytes.
        xph = jnp.stack([x_b[:, :, pr::2, pc::2] for pr in (0, 1) for pc in (0, 1)],
                        axis=0).reshape(P, Cin, M)
    else:
        xph = x_b.reshape(P, Cin, M)

    tn = _choose_batch_tile(N, Ho * Wo)
    steps = N // tn
    Mb = tn * Ho * Wo

    # Per-lane row/col indices inside one image (same for every grid step).
    j = jnp.arange(Mb, dtype=jnp.int32)
    ww = (j % Wo).reshape(1, Mb)
    hh = ((j // Wo) % Ho).reshape(1, Mb)

    s1, b1 = _bn_scale_bias(params["bn1"])
    s2, b2 = _bn_scale_bias(params["bn2"])
    w1 = _conv_weight_matrix(params["w1"])
    w2 = _conv_weight_matrix(params["w2"])

    halo = ((Wo + 1 + 127) // 128) * 128   # lane halo, >= max tap shift

    args = [xph, hh, ww, w1, s1, b1, w2, s2, b2]
    in_specs = [
        pl.BlockSpec((P, Cin, Mb), lambda i: (0, 0, i)),
        pl.BlockSpec((1, Mb), lambda i: (0, 0)),
        pl.BlockSpec((1, Mb), lambda i: (0, 0)),
        pl.BlockSpec((Cout, 9 * Cin), lambda i: (0, 0)),
        pl.BlockSpec((Cout, 1), lambda i: (0, 0)),
        pl.BlockSpec((Cout, 1), lambda i: (0, 0)),
        pl.BlockSpec((Cout, 9 * Cout), lambda i: (0, 0)),
        pl.BlockSpec((Cout, 1), lambda i: (0, 0)),
        pl.BlockSpec((Cout, 1), lambda i: (0, 0)),
    ]
    if has_projection:
        ws = params["ws"].reshape(Cout, Cin).astype(jnp.bfloat16)
        ss, bs = _bn_scale_bias(params["bns"])
        args += [ws, ss, bs]
        in_specs += [
            pl.BlockSpec((Cout, Cin), lambda i: (0, 0)),
            pl.BlockSpec((Cout, 1), lambda i: (0, 0)),
            pl.BlockSpec((Cout, 1), lambda i: (0, 0)),
        ]

    kernel = _make_basic_block_kernel(
        P=P, Cin=Cin, Cout=Cout, Ho=Ho, Wo=Wo, Mb=Mb,
        stride=stride, has_projection=has_projection, halo=halo)

    # NOTE: all blocks/scratch here are KB-scale, far below the scoped VMEM
    # default on any generation.  For deep ResNet stages (Cin, Cout >= 256),
    # lower the batch tile / add a channel grid axis and set vmem_limit_bytes
    # per generation (v7x: 64 MiB physical; v5e scoped default is only 16 MiB).
    out = pl.pallas_call(
        kernel,
        out_shape=jax.ShapeDtypeStruct((Cout, M), jnp.float32),
        grid=(steps,),
        in_specs=in_specs,
        out_specs=pl.BlockSpec((Cout, Mb), lambda i: (0, i)),
        scratch_shapes=[
            pltpu.VMEM((P, Cin, Mb + 2 * halo), jnp.bfloat16),   # conv1 haloed phases
            pltpu.VMEM((9 * Cin, Mb), jnp.bfloat16),             # conv1 patch matrix
            pltpu.VMEM((Cout, Mb + 2 * halo), jnp.bfloat16),     # conv2 haloed input (h1)
            pltpu.VMEM((9 * Cout, Mb), jnp.bfloat16),            # conv2 patch matrix
        ],
        compiler_params=pltpu.CompilerParams(
            dimension_semantics=("parallel",)),
    )(*args)

    return out.reshape(Cout, N, Ho, Wo)


# ----------------------------------------------------------------------------
# BasicBlock forward, NCHW in / NCHW out (matches the PyTorch module)
# ----------------------------------------------------------------------------
@functools.partial(jax.jit, static_argnames=("stride",))
def basic_block_forward(x_nchw, params, *, stride):
    # NCHW <-> CNHW only at the module boundary; when chaining blocks, keep the
    # CNHW layout end-to-end and call basic_block_forward_cnhw directly.
    x = jnp.transpose(x_nchw, (1, 0, 2, 3))
    out = basic_block_forward_cnhw(x, params, stride=stride)
    return jnp.transpose(out, (1, 0, 2, 3))


# ----------------------------------------------------------------------------
# Reference (plain JAX f32, mirrors the PyTorch forward in eval mode)
# ----------------------------------------------------------------------------
def _ref_conv(x, w, stride, padding):
    return jax.lax.conv_general_dilated(
        x, w, (stride, stride), [(padding, padding)] * 2,
        dimension_numbers=("NCHW", "OIHW", "NCHW"))


def _ref_bn(x, bn):
    g, b, m, v = bn
    sh = (1, -1, 1, 1)
    return (x - m.reshape(sh)) / jnp.sqrt(v.reshape(sh) + _BN_EPS) * g.reshape(sh) + b.reshape(sh)


def ref_basic_block(x, params, *, stride):
    in_planes = x.shape[1]
    planes = params["w1"].shape[0]
    out = jax.nn.relu(_ref_bn(_ref_conv(x, params["w1"], stride, 1), params["bn1"]))
    out = _ref_bn(_ref_conv(out, params["w2"], 1, 1), params["bn2"])
    if stride != 1 or in_planes != planes:
        sc = _ref_bn(_ref_conv(x, params["ws"], stride, 0), params["bns"])
    else:
        sc = x
    return jax.nn.relu(out + sc)


# ----------------------------------------------------------------------------
# Deterministic parameter init (shapes from BasicBlock.__init__)
# ----------------------------------------------------------------------------
def init_params(key, in_planes, planes, stride):
    ks = jax.random.split(key, 16)

    def bn(k0, k1, k2, k3, c):
        gamma = 1.0 + 0.1 * jax.random.normal(k0, (c,), jnp.float32)
        beta = 0.1 * jax.random.normal(k1, (c,), jnp.float32)
        mean = 0.1 * jax.random.normal(k2, (c,), jnp.float32)
        var = jax.random.uniform(k3, (c,), jnp.float32, 0.5, 1.5)
        return (gamma, beta, mean, var)

    p = {
        "w1": 0.2 * jax.random.normal(ks[0], (planes, in_planes, 3, 3), jnp.float32),
        "bn1": bn(ks[1], ks[2], ks[3], ks[4], planes),
        "w2": 0.2 * jax.random.normal(ks[5], (planes, planes, 3, 3), jnp.float32),
        "bn2": bn(ks[6], ks[7], ks[8], ks[9], planes),
    }
    if stride != 1 or in_planes != planes:
        p["ws"] = 0.2 * jax.random.normal(ks[10], (planes, in_planes, 1, 1), jnp.float32)
        p["bns"] = bn(ks[11], ks[12], ks[13], ks[14], planes)
    return p


def _assert_close(actual, expected, tol=5e-2):
    """Max abs error relative to the peak reference magnitude (bf16 operand path)."""
    a = np.asarray(actual, np.float32)
    b = np.asarray(expected, np.float32)
    err = float(np.max(np.abs(a - b)) / (np.max(np.abs(b)) + 1e-6))
    assert err < tol, f"max relative-to-peak error {err:.4f} >= {tol}"


if __name__ == "__main__":
    key = jax.random.PRNGKey(0)

    # Case 1: projection shortcut (stride=2, channel change), x: (2, 4, 16, 16)
    k_x1, k_p1, k_x2, k_p2 = jax.random.split(key, 4)
    x1 = jax.random.normal(k_x1, (2, 4, 16, 16), jnp.float32)
    p1 = init_params(k_p1, in_planes=4, planes=8, stride=2)
    y1 = jax.block_until_ready(basic_block_forward(x1, p1, stride=2))
    r1 = jax.block_until_ready(ref_basic_block(x1, p1, stride=2))
    assert y1.shape == (2, 8, 8, 8), y1.shape
    _assert_close(y1, r1)

    # Case 2: identity shortcut (stride=1, same channels), x: (2, 8, 16, 16)
    x2 = jax.random.normal(k_x2, (2, 8, 16, 16), jnp.float32)
    p2 = init_params(k_p2, in_planes=8, planes=8, stride=1)
    y2 = jax.block_until_ready(basic_block_forward(x2, p2, stride=1))
    r2 = jax.block_until_ready(ref_basic_block(x2, p2, stride=1))
    assert y2.shape == (2, 8, 16, 16), y2.shape
    _assert_close(y2, r2)

    print("KERNEL_OK")
</pallas_src>

<mosaic_0001>
module attributes {stable_mosaic.version = 11 : i64} {
  func.func @kernel(%arg0: i32, %arg1: memref<4x4x128xbf16, #tpu.memory_space<vmem>>, %arg2: memref<1x128xi32, #tpu.memory_space<vmem>>, %arg3: memref<1x128xi32, #tpu.memory_space<vmem>>, %arg4: memref<8x36xbf16, #tpu.memory_space<vmem>>, %arg5: memref<8x1xf32, #tpu.memory_space<vmem>>, %arg6: memref<8x1xf32, #tpu.memory_space<vmem>>, %arg7: memref<8x72xbf16, #tpu.memory_space<vmem>>, %arg8: memref<8x1xf32, #tpu.memory_space<vmem>>, %arg9: memref<8x1xf32, #tpu.memory_space<vmem>>, %arg10: memref<8x4xbf16, #tpu.memory_space<vmem>>, %arg11: memref<8x1xf32, #tpu.memory_space<vmem>>, %arg12: memref<8x1xf32, #tpu.memory_space<vmem>>, %arg13: memref<8x128xf32, #tpu.memory_space<vmem>>, %arg14: memref<4x4x384xbf16, #tpu.memory_space<vmem>>, %arg15: memref<36x128xbf16, #tpu.memory_space<vmem>>, %arg16: memref<8x384xbf16, #tpu.memory_space<vmem>>, %arg17: memref<72x128xbf16, #tpu.memory_space<vmem>>) attributes {dimension_semantics = [#tpu.dimension_semantics<parallel>], iteration_bounds = array<i64: 1>, scalar_prefetch = 0 : i64, scratch_operands = 4 : i64, tpu.core_type = #tpu.core_type<tc>, window_params = [{transform_indices = @transform_0, window_bounds = array<i64: 4, 4, 128>}, {pipeline_mode = #tpu.pipeline_mode<synchronous>, transform_indices = @transform_1, window_bounds = array<i64: 1, 128>}, {pipeline_mode = #tpu.pipeline_mode<synchronous>, transform_indices = @transform_2, window_bounds = array<i64: 1, 128>}, {pipeline_mode = #tpu.pipeline_mode<synchronous>, transform_indices = @transform_3, window_bounds = array<i64: 8, 36>}, {pipeline_mode = #tpu.pipeline_mode<synchronous>, transform_indices = @transform_4, window_bounds = array<i64: 8, 1>}, {pipeline_mode = #tpu.pipeline_mode<synchronous>, transform_indices = @transform_5, window_bounds = array<i64: 8, 1>}, {pipeline_mode = #tpu.pipeline_mode<synchronous>, transform_indices = @transform_6, window_bounds = array<i64: 8, 72>}, {pipeline_mode = #tpu.pipeline_mode<synchronous>, transform_indices = @transform_7, window_bounds = array<i64: 8, 1>}, {pipeline_mode = #tpu.pipeline_mode<synchronous>, transform_indices = @transform_8, window_bounds = array<i64: 8, 1>}, {pipeline_mode = #tpu.pipeline_mode<synchronous>, transform_indices = @transform_9, window_bounds = array<i64: 8, 4>}, {pipeline_mode = #tpu.pipeline_mode<synchronous>, transform_indices = @transform_10, window_bounds = array<i64: 8, 1>}, {pipeline_mode = #tpu.pipeline_mode<synchronous>, transform_indices = @transform_11, window_bounds = array<i64: 8, 1>}, {transform_indices = @transform_12, window_bounds = array<i64: 8, 128>}]} {
    %c0 = arith.constant 0 : index
    %c0_0 = arith.constant 0 : index
    %0 = vector.load %arg2[%c0, %c0_0] : memref<1x128xi32, #tpu.memory_space<vmem>>, vector<1x128xi32>
    %c0_1 = arith.constant 0 : index
    %c0_2 = arith.constant 0 : index
    %1 = vector.load %arg3[%c0_1, %c0_2] : memref<1x128xi32, #tpu.memory_space<vmem>>, vector<1x128xi32>
    %c0_3 = arith.constant 0 : index
    %c0_4 = arith.constant 0 : index
    %c0_5 = arith.constant 0 : index
    %2 = vector.load %arg1[%c0_3, %c0_4, %c0_5] : memref<4x4x128xbf16, #tpu.memory_space<vmem>>, vector<1x4x128xbf16>
    %3 = vector.shape_cast %2 : vector<1x4x128xbf16> to vector<4x128xbf16>
    %c0_6 = arith.constant 0 : index
    %c0_7 = arith.constant 0 : index
    %c128 = arith.constant 128 : index
    %4 = vector.load %arg14[%c0_6, %c0_7, %c128] : memref<4x4x384xbf16, #tpu.memory_space<vmem>>, vector<1x4x128xbf16>
    %5 = vector.shape_cast %4 : vector<1x4x128xbf16> to vector<4x128xbf16>
    %6 = vector.shape_cast %3 : vector<4x128xbf16> to vector<1x4x128xbf16>
    tpu.vector_store %arg14[%c0_6, %c0_7, %c128], %6 {strides = array<i32>} : memref<4x4x384xbf16, #tpu.memory_space<vmem>>, vector<1x4x128xbf16>,
    %c1 = arith.constant 1 : index
    %c0_8 = arith.constant 0 : index
    %c0_9 = arith.constant 0 : index
    %7 = vector.load %arg1[%c1, %c0_8, %c0_9] : memref<4x4x128xbf16, #tpu.memory_space<vmem>>, vector<1x4x128xbf16>
    %8 = vector.shape_cast %7 : vector<1x4x128xbf16> to vector<4x128xbf16>
    %c1_10 = arith.constant 1 : index
    %c0_11 = arith.constant 0 : index
    %c128_12 = arith.constant 128 : index
    %9 = vector.load %arg14[%c1_10, %c0_11, %c128_12] : memref<4x4x384xbf16, #tpu.memory_space<vmem>>, vector<1x4x128xbf16>
    %10 = vector.shape_cast %9 : vector<1x4x128xbf16> to vector<4x128xbf16>
    %11 = vector.shape_cast %8 : vector<4x128xbf16> to vector<1x4x128xbf16>
    tpu.vector_store %arg14[%c1_10, %c0_11, %c128_12], %11 {strides = array<i32>} : memref<4x4x384xbf16, #tpu.memory_space<vmem>>, vector<1x4x128xbf16>,
    %c2 = arith.constant 2 : index
    %c0_13 = arith.constant 0 : index
    %c0_14 = arith.constant 0 : index
    %12 = vector.load %arg1[%c2, %c0_13, %c0_14] : memref<4x4x128xbf16, #tpu.memory_space<vmem>>, vector<1x4x128xbf16>
    %13 = vector.shape_cast %12 : vector<1x4x128xbf16> to vector<4x128xbf16>
    %c2_15 = arith.constant 2 : index
    %c0_16 = arith.constant 0 : index
    %c128_17 = arith.constant 128 : index
    %14 = vector.load %arg14[%c2_15, %c0_16, %c128_17] : memref<4x4x384xbf16, #tpu.memory_space<vmem>>, vector<1x4x128xbf16>
    %15 = vector.shape_cast %14 : vector<1x4x128xbf16> to vector<4x128xbf16>
    %16 = vector.shape_cast %13 : vector<4x128xbf16> to vector<1x4x128xbf16>
    tpu.vector_store %arg14[%c2_15, %c0_16, %c128_17], %16 {strides = array<i32>} : memref<4x4x384xbf16, #tpu.memory_space<vmem>>, vector<1x4x128xbf16>,
    %c3 = arith.constant 3 : index
    %c0_18 = arith.constant 0 : index
    %c0_19 = arith.constant 0 : index
    %17 = vector.load %arg1[%c3, %c0_18, %c0_19] : memref<4x4x128xbf16, #tpu.memory_space<vmem>>, vector<1x4x128xbf16>
    %18 = vector.shape_cast %17 : vector<1x4x128xbf16> to vector<4x128xbf16>
    %c3_20 = arith.constant 3 : index
    %c0_21 = arith.constant 0 : index
    %c128_22 = arith.constant 128 : index
    %19 = vector.load %arg14[%c3_20, %c0_21, %c128_22] : memref<4x4x384xbf16, #tpu.memory_space<vmem>>, vector<1x4x128xbf16>
    %20 = vector.shape_cast %19 : vector<1x4x128xbf16> to vector<4x128xbf16>
    %21 = vector.shape_cast %18 : vector<4x128xbf16> to vector<1x4x128xbf16>
    tpu.vector_store %arg14[%c3_20, %c0_21, %c128_22], %21 {strides = array<i32>} : memref<4x4x384xbf16, #tpu.memory_space<vmem>>, vector<1x4x128xbf16>,
    %c3_23 = arith.constant 3 : index
    %c0_24 = arith.constant 0 : index
    %c119 = arith.constant 119 : index
    %22 = vector.load %arg14[%c3_23, %c0_24, %c119] : memref<4x4x384xbf16, #tpu.memory_space<vmem>>, vector<1x4x128xbf16>
    %23 = vector.shape_cast %22 : vector<1x4x128xbf16> to vector<4x128xbf16>
    %c1_i32 = arith.constant 1 : i32
    %24 = vector.broadcast %c1_i32 : i32 to vector<1x128xi32>
    %25 = arith.cmpi sge, %0, %24 : vector<1x128xi32>
    %c1_i32_25 = arith.constant 1 : i32
    %26 = vector.broadcast %c1_i32_25 : i32 to vector<1x128xi32>
    %27 = arith.cmpi sge, %1, %26 : vector<1x128xi32>
    %28 = arith.andi %25, %27 : vector<1x128xi1>
    %cst = arith.constant 0.000000e+00 : bf16
    %29 = vector.broadcast %cst : bf16 to vector<4x128xbf16>
    %30 = vector.shape_cast %28 : vector<1x128xi1> to vector<1x128xi1>
    %31 = vector.broadcast %30 : vector<1x128xi1> to vector<4x128xi1>
    %32 = arith.select %31, %23, %29 : vector<4x128xi1>, vector<4x128xbf16>
    %c0_26 = arith.constant 0 : index
    %c0_27 = arith.constant 0 : index
    %33 = vector.load %arg15[%c0_26, %c0_27] : memref<36x128xbf16, #tpu.memory_space<vmem>>, vector<4x128xbf16>
    tpu.vector_store %arg15[%c0_26, %c0_27], %32 {strides = array<i32>} : memref<36x128xbf16, #tpu.memory_space<vmem>>, vector<4x128xbf16>,
    %c2_28 = arith.constant 2 : index
    %c0_29 = arith.constant 0 : index
    %c120 = arith.constant 120 : index
    %34 = vector.load %arg14[%c2_28, %c0_29, %c120] : memref<4x4x384xbf16, #tpu.memory_space<vmem>>, vector<1x4x128xbf16>
    %35 = vector.shape_cast %34 : vector<1x4x128xbf16> to vector<4x128xbf16>
    %c1_i32_30 = arith.constant 1 : i32
    %36 = vector.broadcast %c1_i32_30 : i32 to vector<1x128xi32>
    %37 = arith.cmpi sge, %0, %36 : vector<1x128xi32>
    %cst_31 = arith.constant 0.000000e+00 : bf16
    %38 = vector.broadcast %cst_31 : bf16 to vector<4x128xbf16>
    %39 = vector.shape_cast %37 : vector<1x128xi1> to vector<1x128xi1>
    %40 = vector.broadcast %39 : vector<1x128xi1> to vector<4x128xi1>
    %41 = arith.select %40, %35, %38 : vector<4x128xi1>, vector<4x128xbf16>
    %c4 = arith.constant 4 : index
    %c0_32 = arith.constant 0 : index
    %42 = vector.load %arg15[%c4, %c0_32] : memref<36x128xbf16, #tpu.memory_space<vmem>>, vector<4x128xbf16>
    tpu.vector_store %arg15[%c4, %c0_32], %41 {strides = array<i32>} : memref<36x128xbf16, #tpu.memory_space<vmem>>, vector<4x128xbf16>,
    %c3_33 = arith.constant 3 : index
    %c0_34 = arith.constant 0 : index
    %c120_35 = arith.constant 120 : index
    %43 = vector.load %arg14[%c3_33, %c0_34, %c120_35] : memref<4x4x384xbf16, #tpu.memory_space<vmem>>, vector<1x4x128xbf16>
    %44 = vector.shape_cast %43 : vector<1x4x128xbf16> to vector<4x128xbf16>
    %c1_i32_36 = arith.constant 1 : i32
    %45 = vector.broadcast %c1_i32_36 : i32 to vector<1x128xi32>
    %46 = arith.cmpi sge, %0, %45 : vector<1x128xi32>
    %cst_37 = arith.constant 0.000000e+00 : bf16
    %47 = vector.broadcast %cst_37 : bf16 to vector<4x128xbf16>
    %48 = vector.shape_cast %46 : vector<1x128xi1> to vector<1x128xi1>
    %49 = vector.broadcast %48 : vector<1x128xi1> to vector<4x128xi1>
    %50 = arith.select %49, %44, %47 : vector<4x128xi1>, vector<4x128xbf16>
    %c8 = arith.constant 8 : index
    %c0_38 = arith.constant 0 : index
    %51 = vector.load %arg15[%c8, %c0_38] : memref<36x128xbf16, #tpu.memory_space<vmem>>, vector<4x128xbf16>
    tpu.vector_store %arg15[%c8, %c0_38], %50 {strides = array<i32>} : memref<36x128xbf16, #tpu.memory_space<vmem>>, vector<4x128xbf16>,
    %c1_39 = arith.constant 1 : index
    %c0_40 = arith.constant 0 : index
    %c127 = arith.constant 127 : index
    %52 = vector.load %arg14[%c1_39, %c0_40, %c127] : memref<4x4x384xbf16, #tpu.memory_space<vmem>>, vector<1x4x128xbf16>
    %53 = vector.shape_cast %52 : vector<1x4x128xbf16> to vector<4x128xbf16>
    %c1_i32_41 = arith.constant 1 : i32
    %54 = vector.broadcast %c1_i32_41 : i32 to vector<1x128xi32>
    %55 = arith.cmpi sge, %1, %54 : vector<1x128xi32>
    %cst_42 = arith.constant 0.000000e+00 : bf16
    %56 = vector.broadcast %cst_42 : bf16 to vector<4x128xbf16>
    %57 = vector.shape_cast %55 : vector<1x128xi1> to vector<1x128xi1>
    %58 = vector.broadcast %57 : vector<1x128xi1> to vector<4x128xi1>
    %59 = arith.select %58, %53, %56 : vector<4x128xi1>, vector<4x128xbf16>
    %c12 = arith.constant 12 : index
    %c0_43 = arith.constant 0 : index
    %60 = vector.load %arg15[%c12, %c0_43] : memref<36x128xbf16, #tpu.memory_space<vmem>>, vector<4x128xbf16>
    tpu.vector_store %arg15[%c12, %c0_43], %59 {strides = array<i32>} : memref<36x128xbf16, #tpu.memory_space<vmem>>, vector<4x128xbf16>,
    %c0_44 = arith.constant 0 : index
    %c0_45 = arith.constant 0 : index
    %c128_46 = arith.constant 128 : index
    %61 = vector.load %arg14[%c0_44, %c0_45, %c128_46] : memref<4x4x384xbf16, #tpu.memory_space<vmem>>, vector<1x4x128xbf16>
    %62 = vector.shape_cast %61 : vector<1x4x128xbf16> to vector<4x128xbf16>
    %c16 = arith.constant 16 : index
    %c0_47 = arith.constant 0 : index
    %63 = vector.load %arg15[%c16, %c0_47] : memref<36x128xbf16, #tpu.memory_space<vmem>>, vector<4x128xbf16>
    tpu.vector_store %arg15[%c16, %c0_47], %62 {strides = array<i32>} : memref<36x128xbf16, #tpu.memory_space<vmem>>, vector<4x128xbf16>,
    %c1_48 = arith.constant 1 : index
    %c0_49 = arith.constant 0 : index
    %c128_50 = arith.constant 128 : index
    %64 = vector.load %arg14[%c1_48, %c0_49, %c128_50] : memref<4x4x384xbf16, #tpu.memory_space<vmem>>, vector<1x4x128xbf16>
    %65 = vector.shape_cast %64 : vector<1x4x128xbf16> to vector<4x128xbf16>
    %c20 = arith.constant 20 : index
    %c0_51 = arith.constant 0 : index
    %66 = vector.load %arg15[%c20, %c0_51] : memref<36x128xbf16, #tpu.memory_space<vmem>>, vector<4x128xbf16>
    tpu.vector_store %arg15[%c20, %c0_51], %65 {strides = array<i32>} : memref<36x128xbf16, #tpu.memory_space<vmem>>, vector<4x128xbf16>,
    %c3_52 = arith.constant 3 : index
    %c0_53 = arith.constant 0 : index
    %c127_54 = arith.constant 127 : index
    %67 = vector.load %arg14[%c3_52, %c0_53, %c127_54] : memref<4x4x384xbf16, #tpu.memory_space<vmem>>, vector<1x4x128xbf16>
    %68 = vector.shape_cast %67 : vector<1x4x128xbf16> to vector<4x128xbf16>
    %c1_i32_55 = arith.constant 1 : i32
    %69 = vector.broadcast %c1_i32_55 : i32 to vector<1x128xi32>
    %70 = arith.cmpi sge, %1, %69 : vector<1x128xi32>
    %cst_56 = arith.constant 0.000000e+00 : bf16
    %71 = vector.broadcast %cst_56 : bf16 to vector<4x128xbf16>
    %72 = vector.shape_cast %70 : vector<1x128xi1> to vector<1x128xi1>
    %73 = vector.broadcast %72 : vector<1x128xi1> to vector<4x128xi1>
    %74 = arith.select %73, %68, %71 : vector<4x128xi1>, vector<4x128xbf16>
    %c24 = arith.constant 24 : index
    %c0_57 = arith.constant 0 : index
    %75 = vector.load %arg15[%c24, %c0_57] : memref<36x128xbf16, #tpu.memory_space<vmem>>, vector<4x128xbf16>
    tpu.vector_store %arg15[%c24, %c0_57], %74 {strides = array<i32>} : memref<36x128xbf16, #tpu.memory_space<vmem>>, vector<4x128xbf16>,
    %c2_58 = arith.constant 2 : index
    %c0_59 = arith.constant 0 : index
    %c128_60 = arith.constant 128 : index
    %76 = vector.load %arg14[%c2_58, %c0_59, %c128_60] : memref<4x4x384xbf16, #tpu.memory_space<vmem>>, vector<1x4x128xbf16>
    %77 = vector.shape_cast %76 : vector<1x4x128xbf16> to vector<4x128xbf16>
    %c28 = arith.constant 28 : index
    %c0_61 = arith.constant 0 : index
    %78 = vector.load %arg15[%c28, %c0_61] : memref<36x128xbf16, #tpu.memory_space<vmem>>, vector<4x128xbf16>
    tpu.vector_store %arg15[%c28, %c0_61], %77 {strides = array<i32>} : memref<36x128xbf16, #tpu.memory_space<vmem>>, vector<4x128xbf16>,
    %c3_62 = arith.constant 3 : index
    %c0_63 = arith.constant 0 : index
    %c128_64 = arith.constant 128 : index
    %79 = vector.load %arg14[%c3_62, %c0_63, %c128_64] : memref<4x4x384xbf16, #tpu.memory_space<vmem>>, vector<1x4x128xbf16>
    %80 = vector.shape_cast %79 : vector<1x4x128xbf16> to vector<4x128xbf16>
    %c32 = arith.constant 32 : index
    %c0_65 = arith.constant 0 : index
    %81 = vector.load %arg15[%c32, %c0_65] : memref<36x128xbf16, #tpu.memory_space<vmem>>, vector<4x128xbf16>
    tpu.vector_store %arg15[%c32, %c0_65], %80 {strides = array<i32>} : memref<36x128xbf16, #tpu.memory_space<vmem>>, vector<4x128xbf16>,
    %c0_66 = arith.constant 0 : index
    %c0_67 = arith.constant 0 : index
    %82 = vector.load %arg4[%c0_66, %c0_67] : memref<8x36xbf16, #tpu.memory_space<vmem>>, vector<8x36xbf16>
    %c0_68 = arith.constant 0 : index
    %c0_69 = arith.constant 0 : index
    %83 = vector.load %arg15[%c0_68, %c0_69] : memref<36x128xbf16, #tpu.memory_space<vmem>>, vector<36x128xbf16>
    %cst_70 = arith.constant dense<0.000000e+00> : vector<8x128xf32>
    %84 = tpu.matmul %82, %83, %cst_70 {dimension_numbers = #tpu.dot_dimension_numbers<[1], [0], [0], [1], [0, 0, 1, 1], [], []>} : vector<8x36xbf16>, vector<36x128xbf16>, vector<8x128xf32> -> vector<8x128xf32>
    %c0_71 = arith.constant 0 : index
    %c0_72 = arith.constant 0 : index
    %85 = vector.load %arg5[%c0_71, %c0_72] : memref<8x1xf32, #tpu.memory_space<vmem>>, vector<8x1xf32>
    %86 = vector.broadcast %85 : vector<8x1xf32> to vector<8x128xf32>
    %87 = arith.mulf %84, %86 : vector<8x128xf32>
    %c0_73 = arith.constant 0 : index
    %c0_74 = arith.constant 0 : index
    %88 = vector.load %arg6[%c0_73, %c0_74] : memref<8x1xf32, #tpu.memory_space<vmem>>, vector<8x1xf32>
    %89 = vector.broadcast %88 : vector<8x1xf32> to vector<8x128xf32>
    %90 = arith.addf %87, %89 : vector<8x128xf32>
    %cst_75 = arith.constant 0.000000e+00 : f32
    %91 = vector.broadcast %cst_75 : f32 to vector<8x128xf32>
    %92 = arith.maximumf %90, %91 : vector<8x128xf32>
    %93 = arith.truncf %92 : vector<8x128xf32> to vector<8x128xbf16>
    %c0_76 = arith.constant 0 : index
    %c128_77 = arith.constant 128 : index
    %94 = vector.load %arg16[%c0_76, %c128_77] : memref<8x384xbf16, #tpu.memory_space<vmem>>, vector<8x128xbf16>
    tpu.vector_store %arg16[%c0_76, %c128_77], %93 {strides = array<i32>} : memref<8x384xbf16, #tpu.memory_space<vmem>>, vector<8x128xbf16>,
    %c0_78 = arith.constant 0 : index
    %c119_79 = arith.constant 119 : index
    %95 = vector.load %arg16[%c0_78, %c119_79] : memref<8x384xbf16, #tpu.memory_space<vmem>>, vector<8x128xbf16>
    %c1_i32_80 = arith.constant 1 : i32
    %96 = vector.broadcast %c1_i32_80 : i32 to vector<1x128xi32>
    %97 = arith.cmpi sge, %0, %96 : vector<1x128xi32>
    %c1_i32_81 = arith.constant 1 : i32
    %98 = vector.broadcast %c1_i32_81 : i32 to vector<1x128xi32>
    %99 = arith.cmpi sge, %1, %98 : vector<1x128xi32>
    %100 = arith.andi %97, %99 : vector<1x128xi1>
    %cst_82 = arith.constant 0.000000e+00 : bf16
    %101 = vector.broadcast %cst_82 : bf16 to vector<8x128xbf16>
    %102 = vector.shape_cast %100 : vector<1x128xi1> to vector<1x128xi1>
    %103 = vector.broadcast %102 : vector<1x128xi1> to vector<8x128xi1>
    %104 = arith.select %103, %95, %101 : vector<8x128xi1>, vector<8x128xbf16>
    %c0_83 = arith.constant 0 : index
    %c0_84 = arith.constant 0 : index
    %105 = vector.load %arg17[%c0_83, %c0_84] : memref<72x128xbf16, #tpu.memory_space<vmem>>, vector<8x128xbf16>
    tpu.vector_store %arg17[%c0_83, %c0_84], %104 {strides = array<i32>} : memref<72x128xbf16, #tpu.memory_space<vmem>>, vector<8x128xbf16>,
    %c0_85 = arith.constant 0 : index
    %c120_86 = arith.constant 120 : index
    %106 = vector.load %arg16[%c0_85, %c120_86] : memref<8x384xbf16, #tpu.memory_space<vmem>>, vector<8x128xbf16>
    %c1_i32_87 = arith.constant 1 : i32
    %107 = vector.broadcast %c1_i32_87 : i32 to vector<1x128xi32>
    %108 = arith.cmpi sge, %0, %107 : vector<1x128xi32>
    %cst_88 = arith.constant 0.000000e+00 : bf16
    %109 = vector.broadcast %cst_88 : bf16 to vector<8x128xbf16>
    %110 = vector.shape_cast %108 : vector<1x128xi1> to vector<1x128xi1>
    %111 = vector.broadcast %110 : vector<1x128xi1> to vector<8x128xi1>
    %112 = arith.select %111, %106, %109 : vector<8x128xi1>, vector<8x128xbf16>
    %c8_89 = arith.constant 8 : index
    %c0_90 = arith.constant 0 : index
    %113 = vector.load %arg17[%c8_89, %c0_90] : memref<72x128xbf16, #tpu.memory_space<vmem>>, vector<8x128xbf16>
    tpu.vector_store %arg17[%c8_89, %c0_90], %112 {strides = array<i32>} : memref<72x128xbf16, #tpu.memory_space<vmem>>, vector<8x128xbf16>,
    %c0_91 = arith.constant 0 : index
    %c121 = arith.constant 121 : index
    %114 = vector.load %arg16[%c0_91, %c121] : memref<8x384xbf16, #tpu.memory_space<vmem>>, vector<8x128xbf16>
    %c1_i32_92 = arith.constant 1 : i32
    %115 = vector.broadcast %c1_i32_92 : i32 to vector<1x128xi32>
    %116 = arith.cmpi sge, %0, %115 : vector<1x128xi32>
    %c7_i32 = arith.constant 7 : i32
    %117 = vector.broadcast %c7_i32 : i32 to vector<1x128xi32>
    %118 = arith.cmpi slt, %1, %117 : vector<1x128xi32>
    %119 = arith.andi %116, %118 : vector<1x128xi1>
    %cst_93 = arith.constant 0.000000e+00 : bf16
    %120 = vector.broadcast %cst_93 : bf16 to vector<8x128xbf16>
    %121 = vector.shape_cast %119 : vector<1x128xi1> to vector<1x128xi1>
    %122 = vector.broadcast %121 : vector<1x128xi1> to vector<8x128xi1>
    %123 = arith.select %122, %114, %120 : vector<8x128xi1>, vector<8x128xbf16>
    %c16_94 = arith.constant 16 : index
    %c0_95 = arith.constant 0 : index
    %124 = vector.load %arg17[%c16_94, %c0_95] : memref<72x128xbf16, #tpu.memory_space<vmem>>, vector<8x128xbf16>
    tpu.vector_store %arg17[%c16_94, %c0_95], %123 {strides = array<i32>} : memref<72x128xbf16, #tpu.memory_space<vmem>>, vector<8x128xbf16>,
    %c0_96 = arith.constant 0 : index
    %c127_97 = arith.constant 127 : index
    %125 = vector.load %arg16[%c0_96, %c127_97] : memref<8x384xbf16, #tpu.memory_space<vmem>>, vector<8x128xbf16>
    %c1_i32_98 = arith.constant 1 : i32
    %126 = vector.broadcast %c1_i32_98 : i32 to vector<1x128xi32>
    %127 = arith.cmpi sge, %1, %126 : vector<1x128xi32>
    %cst_99 = arith.constant 0.000000e+00 : bf16
    %128 = vector.broadcast %cst_99 : bf16 to vector<8x128xbf16>
    %129 = vector.shape_cast %127 : vector<1x128xi1> to vector<1x128xi1>
    %130 = vector.broadcast %129 : vector<1x128xi1> to vector<8x128xi1>
    %131 = arith.select %130, %125, %128 : vector<8x128xi1>, vector<8x128xbf16>
    %c24_100 = arith.constant 24 : index
    %c0_101 = arith.constant 0 : index
    %132 = vector.load %arg17[%c24_100, %c0_101] : memref<72x128xbf16, #tpu.memory_space<vmem>>, vector<8x128xbf16>
    tpu.vector_store %arg17[%c24_100, %c0_101], %131 {strides = array<i32>} : memref<72x128xbf16, #tpu.memory_space<vmem>>, vector<8x128xbf16>,
    %c0_102 = arith.constant 0 : index
    %c128_103 = arith.constant 128 : index
    %133 = vector.load %arg16[%c0_102, %c128_103] : memref<8x384xbf16, #tpu.memory_space<vmem>>, vector<8x128xbf16>
    %c32_104 = arith.constant 32 : index
    %c0_105 = arith.constant 0 : index
    %134 = vector.load %arg17[%c32_104, %c0_105] : memref<72x128xbf16, #tpu.memory_space<vmem>>, vector<8x128xbf16>
    tpu.vector_store %arg17[%c32_104, %c0_105], %133 {strides = array<i32>} : memref<72x128xbf16, #tpu.memory_space<vmem>>, vector<8x128xbf16>,
    %c0_106 = arith.constant 0 : index
    %c129 = arith.constant 129 : index
    %135 = vector.load %arg16[%c0_106, %c129] : memref<8x384xbf16, #tpu.memory_space<vmem>>, vector<8x128xbf16>
    %c7_i32_107 = arith.constant 7 : i32
    %136 = vector.broadcast %c7_i32_107 : i32 to vector<1x128xi32>
    %137 = arith.cmpi slt, %1, %136 : vector<1x128xi32>
    %cst_108 = arith.constant 0.000000e+00 : bf16
    %138 = vector.broadcast %cst_108 : bf16 to vector<8x128xbf16>
    %139 = vector.shape_cast %137 : vector<1x128xi1> to vector<1x128xi1>
    %140 = vector.broadcast %139 : vector<1x128xi1> to vector<8x128xi1>
    %141 = arith.select %140, %135, %138 : vector<8x128xi1>, vector<8x128xbf16>
    %c40 = arith.constant 40 : index
    %c0_109 = arith.constant 0 : index
    %142 = vector.load %arg17[%c40, %c0_109] : memref<72x128xbf16, #tpu.memory_space<vmem>>, vector<8x128xbf16>
    tpu.vector_store %arg17[%c40, %c0_109], %141 {strides = array<i32>} : memref<72x128xbf16, #tpu.memory_space<vmem>>, vector<8x128xbf16>,
    %c0_110 = arith.constant 0 : index
    %c135 = arith.constant 135 : index
    %143 = vector.load %arg16[%c0_110, %c135] : memref<8x384xbf16, #tpu.memory_space<vmem>>, vector<8x128xbf16>
    %c7_i32_111 = arith.constant 7 : i32
    %144 = vector.broadcast %c7_i32_111 : i32 to vector<1x128xi32>
    %145 = arith.cmpi slt, %0, %144 : vector<1x128xi32>
    %c1_i32_112 = arith.constant 1 : i32
    %146 = vector.broadcast %c1_i32_112 : i32 to vector<1x128xi32>
    %147 = arith.cmpi sge, %1, %146 : vector<1x128xi32>
    %148 = arith.andi %145, %147 : vector<1x128xi1>
    %cst_113 = arith.constant 0.000000e+00 : bf16
    %149 = vector.broadcast %cst_113 : bf16 to vector<8x128xbf16>
    %150 = vector.shape_cast %148 : vector<1x128xi1> to vector<1x128xi1>
    %151 = vector.broadcast %150 : vector<1x128xi1> to vector<8x128xi1>
    %152 = arith.select %151, %143, %149 : vector<8x128xi1>, vector<8x128xbf16>
    %c48 = arith.constant 48 : index
    %c0_114 = arith.constant 0 : index
    %153 = vector.load %arg17[%c48, %c0_114] : memref<72x128xbf16, #tpu.memory_space<vmem>>, vector<8x128xbf16>
    tpu.vector_store %arg17[%c48, %c0_114], %152 {strides = array<i32>} : memref<72x128xbf16, #tpu.memory_space<vmem>>, vector<8x128xbf16>,
    %c0_115 = arith.constant 0 : index
    %c136 = arith.constant 136 : index
    %154 = vector.load %arg16[%c0_115, %c136] : memref<8x384xbf16, #tpu.memory_space<vmem>>, vector<8x128xbf16>
    %c7_i32_116 = arith.constant 7 : i32
    %155 = vector.broadcast %c7_i32_116 : i32 to vector<1x128xi32>
    %156 = arith.cmpi slt, %0, %155 : vector<1x128xi32>
    %cst_117 = arith.constant 0.000000e+00 : bf16
    %157 = vector.broadcast %cst_117 : bf16 to vector<8x128xbf16>
    %158 = vector.shape_cast %156 : vector<1x128xi1> to vector<1x128xi1>
    %159 = vector.broadcast %158 : vector<1x128xi1> to vector<8x128xi1>
    %160 = arith.select %159, %154, %157 : vector<8x128xi1>, vector<8x128xbf16>
    %c56 = arith.constant 56 : index
    %c0_118 = arith.constant 0 : index
    %161 = vector.load %arg17[%c56, %c0_118] : memref<72x128xbf16, #tpu.memory_space<vmem>>, vector<8x128xbf16>
    tpu.vector_store %arg17[%c56, %c0_118], %160 {strides = array<i32>} : memref<72x128xbf16, #tpu.memory_space<vmem>>, vector<8x128xbf16>,
    %c0_119 = arith.constant 0 : index
    %c137 = arith.constant 137 : index
    %162 = vector.load %arg16[%c0_119, %c137] : memref<8x384xbf16, #tpu.memory_space<vmem>>, vector<8x128xbf16>
    %c7_i32_120 = arith.constant 7 : i32
    %163 = vector.broadcast %c7_i32_120 : i32 to vector<1x128xi32>
    %164 = arith.cmpi slt, %0, %163 : vector<1x128xi32>
    %c7_i32_121 = arith.constant 7 : i32
    %165 = vector.broadcast %c7_i32_121 : i32 to vector<1x128xi32>
    %166 = arith.cmpi slt, %1, %165 : vector<1x128xi32>
    %167 = arith.andi %164, %166 : vector<1x128xi1>
    %cst_122 = arith.constant 0.000000e+00 : bf16
    %168 = vector.broadcast %cst_122 : bf16 to vector<8x128xbf16>
    %169 = vector.shape_cast %167 : vector<1x128xi1> to vector<1x128xi1>
    %170 = vector.broadcast %169 : vector<1x128xi1> to vector<8x128xi1>
    %171 = arith.select %170, %162, %168 : vector<8x128xi1>, vector<8x128xbf16>
    %c64 = arith.constant 64 : index
    %c0_123 = arith.constant 0 : index
    %172 = vector.load %arg17[%c64, %c0_123] : memref<72x128xbf16, #tpu.memory_space<vmem>>, vector<8x128xbf16>
    tpu.vector_store %arg17[%c64, %c0_123], %171 {strides = array<i32>} : memref<72x128xbf16, #tpu.memory_space<vmem>>, vector<8x128xbf16>,
    %c0_124 = arith.constant 0 : index
    %c0_125 = arith.constant 0 : index
    %173 = vector.load %arg7[%c0_124, %c0_125] : memref<8x72xbf16, #tpu.memory_space<vmem>>, vector<8x72xbf16>
    %c0_126 = arith.constant 0 : index
    %c0_127 = arith.constant 0 : index
    %174 = vector.load %arg17[%c0_126, %c0_127] : memref<72x128xbf16, #tpu.memory_space<vmem>>, vector<72x128xbf16>
    %cst_128 = arith.constant dense<0.000000e+00> : vector<8x128xf32>
    %175 = tpu.matmul %173, %174, %cst_128 {dimension_numbers = #tpu.dot_dimension_numbers<[1], [0], [0], [1], [0, 0, 1, 1], [], []>} : vector<8x72xbf16>, vector<72x128xbf16>, vector<8x128xf32> -> vector<8x128xf32>
    %c0_129 = arith.constant 0 : index
    %c0_130 = arith.constant 0 : index
    %176 = vector.load %arg8[%c0_129, %c0_130] : memref<8x1xf32, #tpu.memory_space<vmem>>, vector<8x1xf32>
    %177 = vector.broadcast %176 : vector<8x1xf32> to vector<8x128xf32>
    %178 = arith.mulf %175, %177 : vector<8x128xf32>
    %c0_131 = arith.constant 0 : index
    %c0_132 = arith.constant 0 : index
    %179 = vector.load %arg9[%c0_131, %c0_132] : memref<8x1xf32, #tpu.memory_space<vmem>>, vector<8x1xf32>
    %180 = vector.broadcast %179 : vector<8x1xf32> to vector<8x128xf32>
    %181 = arith.addf %178, %180 : vector<8x128xf32>
    %c0_133 = arith.constant 0 : index
    %c0_134 = arith.constant 0 : index
    %182 = vector.load %arg10[%c0_133, %c0_134] : memref<8x4xbf16, #tpu.memory_space<vmem>>, vector<8x4xbf16>
    %c0_135 = arith.constant 0 : index
    %c0_136 = arith.constant 0 : index
    %c0_137 = arith.constant 0 : index
    %183 = vector.load %arg1[%c0_135, %c0_136, %c0_137] : memref<4x4x128xbf16, #tpu.memory_space<vmem>>, vector<1x4x128xbf16>
    %184 = vector.shape_cast %183 : vector<1x4x128xbf16> to vector<4x128xbf16>
    %cst_138 = arith.constant dense<0.000000e+00> : vector<8x128xf32>
    %185 = tpu.matmul %182, %184, %cst_138 {dimension_numbers = #tpu.dot_dimension_numbers<[1], [0], [0], [1], [0, 0, 1, 1], [], []>} : vector<8x4xbf16>, vector<4x128xbf16>, vector<8x128xf32> -> vector<8x128xf32>
    %c0_139 = arith.constant 0 : index
    %c0_140 = arith.constant 0 : index
    %186 = vector.load %arg11[%c0_139, %c0_140] : memref<8x1xf32, #tpu.memory_space<vmem>>, vector<8x1xf32>
    %187 = vector.broadcast %186 : vector<8x1xf32> to vector<8x128xf32>
    %188 = arith.mulf %185, %187 : vector<8x128xf32>
    %c0_141 = arith.constant 0 : index
    %c0_142 = arith.constant 0 : index
    %189 = vector.load %arg12[%c0_141, %c0_142] : memref<8x1xf32, #tpu.memory_space<vmem>>, vector<8x1xf32>
    %190 = vector.broadcast %189 : vector<8x1xf32> to vector<8x128xf32>
    %191 = arith.addf %188, %190 : vector<8x128xf32>
    %192 = arith.addf %181, %191 : vector<8x128xf32>
    %cst_143 = arith.constant 0.000000e+00 : f32
    %193 = vector.broadcast %cst_143 : f32 to vector<8x128xf32>
    %194 = arith.maximumf %192, %193 : vector<8x128xf32>
    %c0_144 = arith.constant 0 : index
    %c0_145 = arith.constant 0 : index
    %195 = vector.load %arg13[%c0_144, %c0_145] : memref<8x128xf32, #tpu.memory_space<vmem>>, vector<8x128xf32>
    tpu.vector_store %arg13[%c0_144, %c0_145], %194 {strides = array<i32>} : memref<8x128xf32, #tpu.memory_space<vmem>>, vector<8x128xf32>,
    return
  }
  func.func @transform_0(%arg0: i32) -> (i32, i32, i32) {
    %c0_i32 = arith.constant 0 : i32
    %c0_i32_0 = arith.constant 0 : i32
    %c0_i32_1 = arith.constant 0 : i32
    return %c0_i32, %c0_i32_0, %arg0 : i32, i32, i32
  }
  func.func @transform_1(%arg0: i32) -> (i32, i32) {
    %c0_i32 = arith.constant 0 : i32
    %c0_i32_0 = arith.constant 0 : i32
    %c0_i32_1 = arith.constant 0 : i32
    return %c0_i32, %c0_i32_0 : i32, i32
  }
  func.func @transform_2(%arg0: i32) -> (i32, i32) {
    %c0_i32 = arith.constant 0 : i32
    %c0_i32_0 = arith.constant 0 : i32
    %c0_i32_1 = arith.constant 0 : i32
    return %c0_i32, %c0_i32_0 : i32, i32
  }
  func.func @transform_3(%arg0: i32) -> (i32, i32) {
    %c0_i32 = arith.constant 0 : i32
    %c0_i32_0 = arith.constant 0 : i32
    %c0_i32_1 = arith.constant 0 : i32
    return %c0_i32, %c0_i32_0 : i32, i32
  }
  func.func @transform_4(%arg0: i32) -> (i32, i32) {
    %c0_i32 = arith.constant 0 : i32
    %c0_i32_0 = arith.constant 0 : i32
    %c0_i32_1 = arith.constant 0 : i32
    return %c0_i32, %c0_i32_0 : i32, i32
  }
  func.func @transform_5(%arg0: i32) -> (i32, i32) {
    %c0_i32 = arith.constant 0 : i32
    %c0_i32_0 = arith.constant 0 : i32
    %c0_i32_1 = arith.constant 0 : i32
    return %c0_i32, %c0_i32_0 : i32, i32
  }
  func.func @transform_6(%arg0: i32) -> (i32, i32) {
    %c0_i32 = arith.constant 0 : i32
    %c0_i32_0 = arith.constant 0 : i32
    %c0_i32_1 = arith.constant 0 : i32
    return %c0_i32, %c0_i32_0 : i32, i32
  }
  func.func @transform_7(%arg0: i32) -> (i32, i32) {
    %c0_i32 = arith.constant 0 : i32
    %c0_i32_0 = arith.constant 0 : i32
    %c0_i32_1 = arith.constant 0 : i32
    return %c0_i32, %c0_i32_0 : i32, i32
  }
  func.func @transform_8(%arg0: i32) -> (i32, i32) {
    %c0_i32 = arith.constant 0 : i32
    %c0_i32_0 = arith.constant 0 : i32
    %c0_i32_1 = arith.constant 0 : i32
    return %c0_i32, %c0_i32_0 : i32, i32
  }
  func.func @transform_9(%arg0: i32) -> (i32, i32) {
    %c0_i32 = arith.constant 0 : i32
    %c0_i32_0 = arith.constant 0 : i32
    %c0_i32_1 = arith.constant 0 : i32
    return %c0_i32, %c0_i32_0 : i32, i32
  }
  func.func @transform_10(%arg0: i32) -> (i32, i32) {
    %c0_i32 = arith.constant 0 : i32
    %c0_i32_0 = arith.constant 0 : i32
    %c0_i32_1 = arith.constant 0 : i32
    return %c0_i32, %c0_i32_0 : i32, i32
  }
  func.func @transform_11(%arg0: i32) -> (i32, i32) {
    %c0_i32 = arith.constant 0 : i32
    %c0_i32_0 = arith.constant 0 : i32
    %c0_i32_1 = arith.constant 0 : i32
    return %c0_i32, %c0_i32_0 : i32, i32
  }
  func.func @transform_12(%arg0: i32) -> (i32, i32) {
    %c0_i32 = arith.constant 0 : i32
    %c0_i32_0 = arith.constant 0 : i32
    return %c0_i32, %arg0 : i32, i32
  }
}

</mosaic_0001>

<bundles_post_ra>
// kernel: basic_block_forward.1
= control target key start
LH: loop header
LB: loop body
LE: loop exit
PB: predicated region body
PF: predicated region fallthrough
CT: control target
= control target key end

     0   :  { %v649_v2 = vmov 0   ;;  %s652_s25 = smov 120   ;;  %vm1023_vm15 = vcmask 973824   ;;  %s653_s16 = smov 9   ;;  %s1009_s1 = inlined_call_operand.vmem [shape: s32[1,128], index: 1, kind: input, shape index: {}]   ;;  %s1010_s2 = inlined_call_operand.vmem [shape: s32[1,128], index: 2, kind: input, shape index: {}]   ;;  %s1011_s0 = inlined_call_operand.vmem [shape: bf16[4,4,128], index: 0, kind: input, shape index: {}]   ;;  %s1012_s5 = inlined_call_operand.vmem [shape: f32[8,1], index: 5, kind: input, shape index: {}]   ;;  %s1013_s4 = inlined_call_operand.vmem [shape: f32[8,1], index: 4, kind: input, shape index: {}]   ;;  %s1014_s3 = inlined_call_operand.vmem [shape: bf16[8,36], index: 3, kind: input, shape index: {}]   ;;  %s1015_s9 = inlined_call_operand.vmem [shape: bf16[8,4], index: 9, kind: input, shape index: {}]   ;;  %s1016_s7 = inlined_call_operand.vmem [shape: f32[8,1], index: 7, kind: input, shape index: {}]   ;;  %s1017_s11 = inlined_call_operand.vmem [shape: f32[8,1], index: 11, kind: input, shape index: {}]   ;;  %s1018_s10 = inlined_call_operand.vmem [shape: f32[8,1], index: 10, kind: input, shape index: {}]   ;;  %s1019_s8 = inlined_call_operand.vmem [shape: f32[8,1], index: 8, kind: input, shape index: {}]   ;;  %s1020_s6 = inlined_call_operand.vmem [shape: bf16[8,72], index: 6, kind: input, shape index: {}]   ;;  %s1021_s12 = inlined_call_operand.vmem [shape: f32[8,128], index: 12, kind: output, shape index: {}]  }
   0x1   :  { %v726_v0 = vld [vmem:[%s1009_s1] sm:$0x1]  ;;  %647 = vset.pattern.permute.xlu0 %v649_v2  ;;  %646 = vset.pattern.permute.xlu2 %v649_v2  ;;  %v750_v9 = vunpack.c.l.b16 %v649_v2  ;;  %v765_v13 = vunpack.c.h.b16 %v649_v2  ;;  %s650_s1 = smov 119   ;;  %v597_v23 = vld [vmem:[%s1011_s0 + $0x6] sm:$0x3]  ;;  %s654_s17 = smov 8  }
   0x2   :  { %v731_v1 = vld [vmem:[%s1010_s2] sm:$0x1]  ;;  %vm61_vm0 = vcmp.ge.s32.totalorder %v726_v0, 1  ;;  %648 = vset.pattern.permute.xlu1 %v649_v2  ;;  %s651_s2 = smov 127   ;;  %59 = vst [vmem:[#allocation2 + $0x14] sm:$0x3] %v597_v23 }
   0x3   :  { %vm62_vm1 = vcmp.ge.s32.totalorder %v731_v1, 1  ;;  %v102_v3 = vsel %vm61_vm0, 1, %v649_v2  ;;  %v46_v24 = vld [vmem:[%s1011_s0] sm:$0x3]  ;;  %v596_v25 = vld [vmem:[%s1011_s0 + $0x4] sm:$0x3] }
   0x4   :  { %vm63_vm2 = vmand %vm61_vm0, %vm62_vm1  ;;  %v153_v4 = vsel %vm62_vm1, 1, %v649_v2  ;;  %v103_v6 = vperm.slane %v102_v3, 0  ;;  %47 = vst [vmem:[#allocation2 + $0x2] sm:$0x3] %v46_v24  ;;  %v595_v26 = vld [vmem:[%s1011_s0 + $0x2] sm:$0x3] }
   0x5   :  { %v64_v5 = vsel %vm63_vm2, 1, %v649_v2  ;;  %v154_v7 = vperm.slane %v153_v4, 0  ;;  %55 = vst [vmem:[#allocation2 + $0xe] sm:$0x3] %v596_v25  ;;  %s655_s18 = smov 1   ;;  %v263_v24 = vld [vmem:[%s1013_s4] sm:$0xff] }
   0x6   :  { %v65_v8 = vperm.slane %v64_v5, 0  ;;  %vm752_vm3 = vcmp.eq.s32.totalorder %v103_v6, 1  ;;  %51 = vst [vmem:[#allocation2 + $0x8] sm:$0x3] %v595_v26  ;;  %s656_s4 = smov 121  }
   0x7   :  { %vm756_vm4 = vcmp.eq.s32.totalorder %v154_v7, 1  ;;  %v105_v14 = vsel %vm752_vm3, 1, %v649_v2  ;;  %v553_v12 = vld [vmem:[%s1011_s0] sm:$0x3] }
   0x8   :  { %vm760_vm5 = vcmp.eq.s32.totalorder %v65_v8, 1  ;;  %v156_v15 = vsel %vm756_vm4, 1, %v649_v2  ;;  %v600_v19 = vunpack.i.l.s16 %v105_v14 }
   0x9   :  { %v67_v16 = vsel %vm760_vm5, 1, %v649_v2  ;;  %v602_v17 = vunpack.i.l.s16 %v156_v15  ;;  %v60_v32 = vld [vmem:[#allocation2 + $0x12] sm:$0xf] }
   0xa   :  { %v598_v18 = vunpack.i.l.s16 %v67_v16  ;;  %vm111_vm11 = vcmp.ne.s32.totalorder %v600_v19, %v750_v9  ;;  %vm112_vm12 = vcmp.ne.s32.totalorder %v600_v19, %v765_v13  ;;  %v140_v45 = vld [vmem:[#allocation2 + $0x12] sm:$0xf] }
   0xb   :  { %vm162_vm6 = vcmp.ne.s32.totalorder %v602_v17, %v750_v9  ;;  %vm163_vm7 = vcmp.ne.s32.totalorder %v602_v17, %v765_v13  ;;  %vm113_vm14 = vmpackc.low %vm112_vm12, %vm111_vm11  ;;  %vm1024_vm12 = vcmask 1039360   ;;  %v200_v55 = vld [vmem:[#allocation2 + $0x12] sm:$0xf]  ;;  %v191_v8 = vld [vmem:[#allocation2 + $0x2] sm:$0x3] }
   0xc   :  { %vm73_vm8 = vcmp.ne.s32.totalorder %v598_v18, %v750_v9  ;;  %vm74_vm9 = vcmp.ne.s32.totalorder %v598_v18, %v765_v13  ;;  %vm164_vm13 = vmpackc.low %vm163_vm7, %vm162_vm6  ;;  %v114_v22 = vsel %vm113_vm14, 65537, %v649_v2  ;;  %v101_v40 = vld [vmem:[#allocation2 + $0xc] sm:$0xf]  ;;  %v219_v6 = vld [vmem:[#allocation2 + $0x14] sm:$0x3] }
   0xd   :  { %vm75_vm10 = vmpackc.low %vm74_vm9, %vm73_vm8  ;;  %v165_v21 = vsel %vm164_vm13, 65537, %v649_v2  ;;  %vm1022_vm8 = vcmask 982016   ;;  %v152_v50 = vld [vmem:[#allocation2 + $0x6] sm:$0xf]  ;;  %v212_v58 = vld [vmem:[#allocation2 + $0xe] sm:$0x3] }
   0xe   :  { %v76_v20 = vsel %vm75_vm10, 65537, %v649_v2  ;;  %166 = vrot.lane.b32.xlu1 %v165_v21, %s651_s2  ;;  %v193_v53 = vld [vmem:[#allocation2 + $0x8] sm:$0x3]  ;;  %220 = vst [vmem:[#allocation3 + $0x10] sm:$0x3] %v219_v6 }
   0xf   :  { %77 = vrot.lane.b32.xlu0 %v76_v20, %s650_s1  ;;  %192 = vst [vmem:[#allocation3 + $0x8] sm:$0x3] %v191_v8 }
  0x15   :  { %v226_v7 = vld [vmem:[#allocation3 + $0x10] sm:$0x3] }
  0x16   :  { %v236_v14 = vunpack.c.l.b16 %v226_v7 }
  0x17   :  { %115 = vrot.lane.b32.xlu0 %v114_v22, %s652_s25  ;;  %v270_v22 = vld [vmem:[%s1012_s5] sm:$0xff]  ;;  %s657_s5 = smov 7  }
  0x18   :  { %v239_v15 = vpack.c.b16 %v236_v14, %v236_v14 }
  0x80   :  { %v167_v39 = vpop.permute.xlu1 %166 }
  0x81   :  { %v78_v27 = vpop.permute.xlu0 %77  ;;  %v168_v41 = vrot.slane %v167_v39, 6 }
  0x82   :  { %v79_v28 = vrot.slane %v78_v27, 6 }
  0x83   :  { %v170_v44 = vsel %vm1024_vm12, %v168_v41, %v167_v39 }
  0x84   :  { %v81_v29 = vsel %vm1023_vm15, %v79_v28, %v78_v27  ;;  %v171_v46 = vunpack.c.l.b16 %v170_v44  ;;  %v172_v47 = vunpack.c.h.b16 %v170_v44 }
  0x85   :  { %v82_v30 = vunpack.c.l.b16 %v81_v29  ;;  %v83_v31 = vunpack.c.h.b16 %v81_v29 }
  0x86   :  { %vm175_vm13 = vcmp.ne.s32.totalorder %v171_v46, %v750_v9  ;;  %vm176_vm14 = vcmp.ne.s32.totalorder %v172_v47, %v765_v13 }
  0x87   :  { %vm86_vm2 = vcmp.ne.s32.totalorder %v82_v30, %v750_v9  ;;  %vm87_vm6 = vcmp.ne.s32.totalorder %v83_v31, %v765_v13 }
  0x88   :  { %vm88_vm7 = vmpackc.low %vm87_vm6, %vm86_vm2  ;;  %vm97_vm6 = vcmask 72704  }
  0x89   :  { %v89_v33 = vsel %vm88_vm7, %v60_v32, 0  ;;  %v116_v34 = vpop.permute.xlu0 %115  ;;  %vm177_vm2 = vmpackc.low %vm176_vm14, %vm175_vm13  ;;  %vm136_vm7 = vcmask 64512  }
  0x8a   :  { %91 = vst [vmem:[#allocation1] ss:$2 sm:$0xff] %v89_v33  ;;  %v117_v35 = vrot.slane %v116_v34, 6  ;;  %v178_v51 = vsel %vm177_vm2, %v152_v50, 0  ;;  %v201_v57 = vsel %vm177_vm2, %v200_v55, 0 }
  0x8c   :  { %v119_v36 = vsel %vm1022_vm8, %v117_v35, %v116_v34 }
  0x8d   :  { %v120_v37 = vunpack.c.l.b16 %v119_v36  ;;  %v121_v38 = vunpack.c.h.b16 %v119_v36 }
  0x8f   :  { %vm124_vm9 = vcmp.ne.s32.totalorder %v120_v37, %v750_v9  ;;  %vm125_vm10 = vcmp.ne.s32.totalorder %v121_v38, %v765_v13 }
  0x90   :  { %vm126_vm11 = vmpackc.low %vm125_vm10, %vm124_vm9  ;;  %vm246_vm9 = vcmask 1041408   ;;  %vm325_vm10 = vcmp.lt.s32.totalorder %v731_v1, 7 }
  0x91   :  { %v92_v42 = vld.sshfl [vmem:[#allocation1] sm:$0xff pattern:$0x75643120]  ;;  %v127_v43 = vsel %vm126_vm11, %v101_v40, 0  ;;  %v141_v48 = vsel %vm126_vm11, %v140_v45, 0  ;;  %v248_v18 = vsel %vm246_vm9, %v239_v15, 0  ;;  %vm326_vm14 = vmand %vm61_vm0, %vm325_vm10 }
  0x92   :  { %130 = vst [vmem:[#allocation1 + $0x1] ss:$2 sm:$0xff] %v127_v43  ;;  %94 = vrot.lane.b32.xlu2 %v92_v42, %s653_s16  ;;  %255 = vmatpush.bf16.msra.mxu0 %v248_v18  ;;  %vm403_vm11 = vcmp.lt.s32.totalorder %v726_v0, 7  ;;  %v327_v25 = vsel %vm326_vm14, 1, %v649_v2  ;;  %v378_v30 = vsel %vm325_vm10, 1, %v649_v2 }
  0x93   :  { %vm455_vm13 = vmand %vm403_vm11, %vm325_vm10  ;;  %v430_v23 = vsel %vm403_vm11, 1, %v649_v2  ;;  %v328_v27 = vperm.slane %v327_v25, 0  ;;  %v379_v35 = vperm.slane %v378_v30, 0  ;;  %v221_v45 = vld [vmem:[%s1014_s3] sm:$0xf] }
  0x94   :  { %v456_v20 = vsel %vm455_vm13, 1, %v649_v2  ;;  %v431_v26 = vperm.slane %v430_v23, 0  ;;  %vm404_vm14 = vmand %vm403_vm11, %vm62_vm1  ;;  %vm242_vm11 = vcmask 293888  }
  0x95   :  { %v457_v21 = vperm.slane %v456_v20, 0  ;;  %vm329_vm0 = vcmp.eq.s32.totalorder %v328_v27, 1  ;;  %v405_v32 = vsel %vm404_vm14, 1, %v649_v2  ;;  %vm380_vm10 = vcmp.eq.s32.totalorder %v379_v35, 1 }
  0x96   :  { %vm840_vm8 = vcmp.eq.s32.totalorder %v431_v26, 1  ;;  %vm330_vm12 = vmpackc.low %vm329_vm0, %vm329_vm0  ;;  %v406_v34 = vperm.slane %v405_v32, 0 }
  0x97   :  { %vm458_vm2 = vcmp.eq.s32.totalorder %v457_v21, 1  ;;  %vm433_vm15 = vmpackc.low %vm840_vm8, %vm840_vm8  ;;  %v331_v31 = vsel %vm330_vm12, 65537, %v649_v2 }
  0x98   :  { %vm459_vm13 = vmpackc.low %vm458_vm2, %vm458_vm2  ;;  %vm187_vm2 = vcmask 7168   ;;  %v434_v37 = vsel %vm433_vm15, 65537, %v649_v2  ;;  %vm407_vm12 = vcmp.eq.s32.totalorder %v406_v34, 1 }
  0x99   :  { %v131_v49 = vld.sshfl [vmem:[#allocation1] sm:$0xff pattern:$0x75643120]  ;;  %v460_v28 = vsel %vm459_vm13, 65537, %v649_v2  ;;  %vm303_vm8 = vmpackc.low %vm752_vm3, %vm752_vm3  ;;  %vm349_vm13 = vcmask 56320  }
  0x9a   :  { %133 = vrot.lane.b32.xlu2 %v131_v49, %s654_s17  ;;  %143 = vst [vmem:[#allocation1] ss:$2 sm:$0xff] %v141_v48  ;;  %vm408_vm1 = vmpackc.low %vm407_vm12, %vm407_vm12  ;;  %v304_v38 = vsel %vm303_vm8, 65537, %v649_v2  ;;  %v559_v48 = vsel %vm246_vm9, %v553_v12, 0  ;;  %vm335_vm9 = vcmask 990208  }
  0x9b   :  { %v409_v1 = vsel %vm408_vm1, 65537, %v649_v2  ;;  %vm354_vm15 = vmpackc.low %vm756_vm4, %vm756_vm4  ;;  %568 = vmatpush.bf16.msra.mxu2 %v559_v48  ;;  %vm1041_vm1 = vcmask 1039360  }
  0x9c   :  { %vm381_vm3 = vmpackc.low %vm380_vm10, %vm380_vm10  ;;  %v355_v40 = vsel %vm354_vm15, 65537, %v649_v2 }
  0x9d   :  { %v382_v41 = vsel %vm381_vm3, 65537, %v649_v2  ;;  %vm281_vm4 = vmpackc.low %vm760_vm5, %vm760_vm5  ;;  %vm554_vm5 = vcmask 31744  }
  0x9e   :  { %v282_v11 = vsel %vm281_vm4, 65537, %v649_v2  ;;  %v552_v2 = vld [vmem:[%s1015_s9] sm:$0xf] }
  0x9f   :  { %630 = vmatmul.msk.bf16.vlgmr.msra.gmra.mxu2 %vm554_vm5, %v552_v2 }
  0xa1   :  { %v144_v52 = vld.sshfl [vmem:[#allocation1] sm:$0xff pattern:$0x75643120] }
  0xa2   :  { %146 = vrot.lane.b32.xlu0 %v144_v52, %s654_s17  ;;  %181 = vst [vmem:[#allocation1 + $0x1] ss:$2 sm:$0xff] %v178_v51  ;;  %266 = vperm.xlu2 %646, %v263_v24  }
  0xa9   :  { %v182_v54 = vld.sshfl [vmem:[#allocation1] sm:$0xff pattern:$0x75643120] }
  0xaa   :  { %196 = vst [vmem:[#allocation1 + $0x1] ss:$2 sm:$0xff] %v193_v53  ;;  %273 = vperm.xlu0 %647, %v270_v22   ;;  %410 = vrot.lane.b32.xlu2 %v409_v1, %s657_s5 }
  0xb1   :  { %v197_v56 = vld.sshfl [vmem:[#allocation1] sm:$0xff pattern:$0x75643120] }
  0xb2   :  { %199 = vst [vmem:[#allocation3 + $0x8] sm:$0xc] %v197_v56  ;;  %332 = vrot.lane.b32.xlu0 %v331_v31, %s656_s4  ;;  %383 = vrot.lane.b32.xlu2 %v382_v41, %s655_s18 }
  0xb3   :  { %203 = vst [vmem:[#allocation1] ss:$2 sm:$0xff] %v201_v57 }
  0xba   :  { %v204_v59 = vld.sshfl [vmem:[#allocation1] sm:$0xff pattern:$0x75643120]  ;;  %305 = vrot.lane.b32.xlu0 %v304_v38, %s652_s25  ;;  %283 = vrot.lane.b32.xlu2 %v282_v11, %s650_s1 }
  0xbb   :  { %206 = vrot.lane.b32.xlu1 %v204_v59, %s655_s18  ;;  %215 = vst [vmem:[#allocation1 + $0x1] ss:$2 sm:$0xff] %v212_v58 }
  0xc2   :  { %v216_v60 = vld.sshfl [vmem:[#allocation1] sm:$0xff pattern:$0x75643120] }
  0xc3   :  { %184 = vrot.lane.b32.xlu1 %v182_v54, %s655_s18  ;;  %218 = vst [vmem:[#allocation3 + $0xc] sm:$0xc] %v216_v60 }
  0xcb   :  { %461 = vrot.lane.b32.xlu1 %v460_v28, %s653_s16 }
  0xd3   :  { %435 = vrot.lane.b32.xlu1 %v434_v37, %s654_s17 }
  0xdb   :  { %356 = vrot.lane.b32.xlu1 %v355_v40, %s651_s2 }
  0xec   :  { %v95_v61 = vpop.permute.xlu2 %94 }
  0xed   :  { %v96_v62 = vrot.slane %v95_v61, 4 }
  0xef   :  { %v98_v63 = vsel %vm97_vm6, %v95_v61, %v96_v62 }
  0xf0   :  { %100 = vst [vmem:[#allocation3] sm:$0x3] %v98_v63 }
  0xf4   :  { %v134_v3 = vpop.permute.xlu2 %133 }
  0xf5   :  { %v135_v4 = vrot.slane %v134_v3, 4 }
  0xf7   :  { %v137_v5 = vsel %vm136_vm7, %v134_v3, %v135_v4 }
  0xf8   :  { %139 = vst [vmem:[#allocation3] sm:$0xc] %v137_v5 }
  0xfc   :  { %v267_v46 = vpop.permute.xlu2 %266 }
 0x104   :  { %v411_v49 = vpop.permute.xlu2 %410 }
 0x105   :  { %v412_v53 = vrot.slane %v411_v49, 4 }
 0x107   :  { %v413_v60 = vsel %vm349_vm13, %v412_v53, %v411_v49 }
 0x108   :  { %v414_v6 = vunpack.c.l.b16 %v413_v60  ;;  %v415_v7 = vunpack.c.h.b16 %v413_v60 }
 0x10a   :  { %vm906_vm8 = vcmp.ne.s32.totalorder %v414_v6, %v750_v9  ;;  %vm911_vm12 = vcmp.ne.s32.totalorder %v415_v7, %v765_v13 }
 0x10b   :  { %vm420_vm4 = vmpackc.low %vm911_vm12, %vm906_vm8  ;;  %vm1052_vm12 = vcmask 973824  }
 0x10c   :  { %v384_v58 = vpop.permute.xlu2 %383 }
 0x10d   :  { %v385_v14 = vrot.slane %v384_v58, 4 }
 0x10f   :  { %v386_v22 = vsel %vm187_vm2, %v385_v14, %v384_v58 }
 0x110   :  { %v387_v30 = vunpack.c.l.b16 %v386_v22  ;;  %v388_v31 = vunpack.c.h.b16 %v386_v22 }
 0x112   :  { %vm942_vm5 = vcmp.ne.s32.totalorder %v387_v30, %v750_v9 }
 0x114   :  { %v147_v16 = vpop.permute.xlu0 %146  ;;  %v284_v27 = vpop.permute.xlu2 %283 }
 0x115   :  { %v148_v17 = vrot.slane %v147_v16, 4  ;;  %v285_v37 = vrot.slane %v284_v27, 4 }
 0x117   :  { %v149_v19 = vsel %vm136_vm7, %v147_v16, %v148_v17  ;;  %v286_v11 = vsel %vm1052_vm12, %v285_v37, %v284_v27 }
 0x118   :  { %151 = vst [vmem:[#allocation3 + $0x4] sm:$0x3] %v149_v19  ;;  %v288_v12 = vunpack.c.h.b16 %v286_v11 }
 0x11c   :  { %v274_v50 = vpop.permute.xlu0 %273 }
 0x124   :  { %v333_v61 = vpop.permute.xlu0 %332 }
 0x125   :  { %v334_v19 = vrot.slane %v333_v61, 4 }
 0x127   :  { %v336_v26 = vsel %vm335_vm9, %v334_v19, %v333_v61 }
 0x128   :  { %v337_v35 = vunpack.c.l.b16 %v336_v26 }
 0x12c   :  { %v306_v32 = vpop.permute.xlu0 %305 }
 0x12d   :  { %v207_v33 = vpop.permute.xlu1 %206  ;;  %v307_v38 = vrot.slane %v306_v32, 4 }
 0x12e   :  { %v208_v36 = vrot.slane %v207_v33, 4 }
 0x130   :  { %v209_v0 = vsel %vm187_vm2, %v207_v33, %v208_v36  ;;  %v338_v36 = vunpack.c.h.b16 %v336_v26 }
 0x131   :  { %211 = vst [vmem:[#allocation3 + $0xc] sm:$0x3] %v209_v0 }
 0x135   :  { %v185_v10 = vpop.permute.xlu1 %184 }
 0x136   :  { %v186_v39 = vrot.slane %v185_v10, 4 }
 0x138   :  { %v188_v42 = vsel %vm187_vm2, %v185_v10, %v186_v39  ;;  %v632_v43 = vld [vmem:[#allocation3 + $0x8] sm:$0xff] }
 0x139   :  { %190 = vst [vmem:[#allocation3 + $0x4] sm:$0xc] %v188_v42  ;;  %256 = vmatpush.bf16.msra.mxu0 %v632_v43 }
 0x13d   :  { %v462_v47 = vpop.permute.xlu1 %461 }
 0x13e   :  { %v463_v56 = vrot.slane %v462_v47, 4 }
 0x140   :  { %v631_v44 = vld [vmem:[#allocation3] sm:$0xff]  ;;  %v464_v3 = vsel %vm97_vm6, %v463_v56, %v462_v47  ;;  %v287_v47 = vunpack.c.l.b16 %v286_v11 }
 0x141   :  { %257 = vmatpush.bf16.msra.mxu0 %v631_v44  ;;  %v465_v17 = vunpack.c.l.b16 %v464_v3  ;;  %v466_v18 = vunpack.c.h.b16 %v464_v3 }
 0x143   :  { %vm918_vm10 = vcmp.ne.s32.totalorder %v465_v17, %v750_v9  ;;  %vm923_vm15 = vcmp.ne.s32.totalorder %v466_v18, %v765_v13 }
 0x144   :  { %612 = vmatmul.msk.bf16.vlgmr.msra.gmra.mxu0 %vm242_vm11, %v221_v45  ;;  %vm471_vm11 = vmpackc.low %vm923_vm15, %vm918_vm10  ;;  %vm342_vm10 = vcmp.ne.s32.totalorder %v338_v36, %v765_v13  ;;  %vm1055_vm15 = vcmask 982016  }
 0x145   :  { %v436_v51 = vpop.permute.xlu1 %435  ;;  %v308_v45 = vsel %vm1055_vm15, %v307_v38, %v306_v32 }
 0x146   :  { %v437_v52 = vrot.slane %v436_v51, 4  ;;  %v309_v48 = vunpack.c.l.b16 %v308_v45  ;;  %v310_v2 = vunpack.c.h.b16 %v308_v45 }
 0x148   :  { %v438_v59 = vsel %vm136_vm7, %v437_v52, %v436_v51  ;;  %v538_v52 = vld [vmem:[%s1016_s7] sm:$0xff] }
 0x149   :  { %v439_v4 = vunpack.c.l.b16 %v438_v59  ;;  %v440_v5 = vunpack.c.h.b16 %v438_v59 }
 0x14b   :  { %vm895_vm0 = vcmp.ne.s32.totalorder %v439_v4, %v750_v9  ;;  %vm900_vm14 = vcmp.ne.s32.totalorder %v440_v5, %v765_v13 }
 0x14c   :  { %vm445_vm3 = vmpackc.low %vm900_vm14, %vm895_vm0  ;;  %vm947_vm0 = vcmp.ne.s32.totalorder %v388_v31, %v765_v13 }
 0x14d   :  { %v357_v63 = vpop.permute.xlu1 %356 }
 0x14e   :  { %v358_v16 = vrot.slane %v357_v63, 4 }
 0x150   :  { %v359_v25 = vsel %vm1041_vm1, %v358_v16, %v357_v63  ;;  %vm960_vm1 = vcmp.ne.s32.totalorder %v337_v35, %v750_v9 }
 0x151   :  { %v360_v33 = vunpack.c.l.b16 %v359_v25  ;;  %v361_v34 = vunpack.c.h.b16 %v359_v25 }
 0x153   :  { %vm953_vm14 = vcmp.ne.s32.totalorder %v360_v33, %v750_v9  ;;  %vm365_vm8 = vcmp.ne.s32.totalorder %v361_v34, %v765_v13  ;;  %v480_v34 = vld [vmem:[%s1020_s6] sm:$0xf] }
 0x1c1   :  { %v259_v54 = vpop.f32.mrf.mxu0 }
 0x1c2   :  { %v269_v55 = vmul.f32 %v267_v46, %v259_v54 }
 0x1c4   :  { %v276_v57 = vadd.f32 %v274_v50, %v269_v55  ;;  %v581_v55 = vld [vmem:[%s1017_s11] sm:$0xff] }
 0x1c6   :  { %v277_v62 = vmax.f32 %v276_v57, 0.0 }
 0x1c8   :  { %v278_v8 = vpack.c.bf16 %v277_v62, %v277_v62  ;;  %v570_v62 = vpop.f32.mrf.mxu2 }
 0x1c9   :  { %v261_v15 = vpop.f32.mrf.mxu0 }
 0x1ca   :  { %279 = vst [vmem:[#allocation4 + $0x4] sm:$0xf] %v278_v8 }
 0x1d0   :  { %v572_v5 = vpop.f32.mrf.mxu2 }
 0x1d1   :  { %v454_v0 = vld [vmem:[#allocation4 + $0x4] sm:$0xff] }
 0x1d2   :  { %v375_v1 = vld [vmem:[#allocation4 + $0x4] sm:$0xf]  ;;  %v472_v10 = vsel %vm471_vm11, %v454_v0, 0  ;;  %v446_v39 = vsel %vm445_vm3, %v454_v0, 0  ;;  %v421_v40 = vsel %vm420_vm4, %v454_v0, 0  ;;  %vm393_vm3 = vmpackc.low %vm947_vm0, %vm942_vm5  ;;  %vm291_vm5 = vcmp.ne.s32.totalorder %v287_v47, %v750_v9 }
 0x1d3   :  { %376 = vst [vmem:[#allocation5 + $0x10] sm:$0xf] %v375_v1  ;;  %474 = vrot.lane.b32.xlu1 %v472_v10, %s650_s1  ;;  %448 = vrot.lane.b32.xlu0 %v446_v39, %s652_s25  ;;  %v353_v46 = vld [vmem:[#allocation4] sm:$0xff]  ;;  %vm366_vm4 = vmpackc.low %vm365_vm8, %vm953_vm14  ;;  %v394_v49 = vsel %vm393_vm3, %v454_v0, 0  ;;  %vm292_vm0 = vcmp.ne.s32.totalorder %v288_v12, %v765_v13  ;;  %vm313_vm14 = vcmp.ne.s32.totalorder %v309_v48, %v750_v9  ;;  %v574_v9 = vld [vmem:[%s1018_s10] sm:$0xff] }
 0x1d4   :  { %423 = vrot.lane.b32.xlu2 %v421_v40, %s656_s4  ;;  %vm343_vm11 = vmpackc.low %vm342_vm10, %vm960_vm1  ;;  %v367_v50 = vsel %vm366_vm4, %v353_v46, 0  ;;  %vm314_vm8 = vcmp.ne.s32.totalorder %v310_v2, %v765_v13  ;;  %v545_v13 = vld [vmem:[%s1019_s8] sm:$0xff]  ;;  %vm1056_vm10 = vcmask 973824  }
 0x1d5   :  { %v344_v51 = vsel %vm343_vm11, %v353_v46, 0  ;;  %vm293_vm12 = vmpackc.low %vm292_vm0, %vm291_vm5 }
 0x1d6   :  { %vm315_vm1 = vmpackc.low %vm314_vm8, %vm313_vm14  ;;  %v294_v53 = vsel %vm293_vm12, %v353_v46, 0 }
 0x1d7   :  { %v316_v54 = vsel %vm315_vm1, %v353_v46, 0 }
 0x1db   :  { %396 = vrot.lane.b32.xlu1 %v394_v49, %s651_s2  ;;  %369 = vrot.lane.b32.xlu0 %v367_v50, %s655_s18 }
 0x1dc   :  { %346 = vrot.lane.b32.xlu2 %v344_v51, %s657_s5 }
 0x1e3   :  { %541 = vperm.xlu0 %647, %v538_v52   ;;  %296 = vrot.lane.b32.xlu1 %v294_v53, %s653_s16 }
 0x1e4   :  { %318 = vrot.lane.b32.xlu2 %v316_v54, %s654_s17 }
 0x1eb   :  { %584 = vperm.xlu0 %647, %v581_v55   ;;  %577 = vperm.xlu1 %648, %v574_v9  }
 0x1ec   :  { %548 = vperm.xlu2 %646, %v545_v13  }
 0x22e   :  { %v424_v56 = vpop.permute.xlu2 %423 }
 0x22f   :  { %v425_v57 = vrot.slane %v424_v56, 4 }
 0x231   :  { %v426_v58 = vsel %vm335_vm9, %v424_v56, %v425_v57  ;;  %vm1057_vm9 = vmmov %vm1055_vm15 }
 0x232   :  { %428 = vst [vmem:[#allocation5 + $0x18] sm:$0xf] %v426_v58 }
 0x236   :  { %v347_v59 = vpop.permute.xlu2 %346 }
 0x237   :  { %v348_v60 = vrot.slane %v347_v59, 4 }
 0x239   :  { %v350_v61 = vsel %vm349_vm13, %v347_v59, %v348_v60  ;;  %vm1058_vm13 = vcmask 1039360  }
 0x23a   :  { %352 = vst [vmem:[#allocation5 + $0x8] sm:$0xf] %v350_v61 }
 0x23e   :  { %v319_v63 = vpop.permute.xlu2 %318 }
 0x23f   :  { %v320_v3 = vrot.slane %v319_v63, 4 }
 0x241   :  { %v321_v4 = vsel %vm136_vm7, %v319_v63, %v320_v3  ;;  %vm521_vm7 = vcmask 1043456  }
 0x242   :  { %323 = vst [vmem:[#allocation5 + $0x4] sm:$0xf] %v321_v4 }
 0x245   :  { %v475_v6 = vpop.permute.xlu1 %474  ;;  %v449_v7 = vpop.permute.xlu0 %448 }
 0x246   :  { %v476_v8 = vrot.slane %v475_v6, 4  ;;  %v450_v14 = vrot.slane %v449_v7, 4  ;;  %v549_v38 = vpop.permute.xlu2 %548 }
 0x248   :  { %v477_v15 = vsel %vm1056_vm10, %v475_v6, %v476_v8  ;;  %v451_v16 = vsel %vm1057_vm9, %v449_v7, %v450_v14 }
 0x249   :  { %479 = vst [vmem:[#allocation5 + $0x20] sm:$0xf] %v477_v15 }
 0x24a   :  { %453 = vst [vmem:[#allocation5 + $0x1c] sm:$0xf] %v451_v16 }
 0x24d   :  { %v397_v17 = vpop.permute.xlu1 %396  ;;  %v370_v18 = vpop.permute.xlu0 %369 }
 0x24e   :  { %v398_v19 = vrot.slane %v397_v17, 4  ;;  %v371_v20 = vrot.slane %v370_v18, 4 }
 0x250   :  { %v399_v21 = vsel %vm1058_vm13, %v397_v17, %v398_v19  ;;  %v372_v22 = vsel %vm187_vm2, %v370_v18, %v371_v20  ;;  %v489_v23 = vld [vmem:[#allocation5 + $0x20] sm:$0xf]  ;;  %vm517_vm2 = vcmask 588800  }
 0x251   :  { %401 = vst [vmem:[#allocation5 + $0x14] sm:$0xf] %v399_v21  ;;  %v507_v24 = vunpack.c.l.b16 %v489_v23  ;;  %v636_v30 = vld [vmem:[#allocation5 + $0x18] sm:$0xff] }
 0x252   :  { %374 = vst [vmem:[#allocation5 + $0xc] sm:$0xf] %v372_v22 }
 0x253   :  { %v512_v25 = vpack.c.b16 %v507_v24, %v507_v24 }
 0x255   :  { %v297_v26 = vpop.permute.xlu1 %296  ;;  %v523_v27 = vsel %vm521_vm7, %v512_v25, 0  ;;  %v542_v35 = vpop.permute.xlu0 %541 }
 0x256   :  { %v298_v28 = vrot.slane %v297_v26, 4  ;;  %528 = vmatpush.bf16.msra.mxu1 %v523_v27 }
 0x258   :  { %v299_v29 = vsel %vm97_vm6, %v297_v26, %v298_v28  ;;  %v635_v31 = vld [vmem:[#allocation5 + $0x10] sm:$0xff] }
 0x259   :  { %301 = vst [vmem:[#allocation5] sm:$0xf] %v299_v29  ;;  %v634_v32 = vld [vmem:[#allocation5 + $0x8] sm:$0xff] }
 0x25a   :  { %529 = vmatpush.bf16.msra.mxu1 %v636_v30 }
 0x25d   :  { %v578_v36 = vpop.permute.xlu1 %577  ;;  %v585_v10 = vpop.permute.xlu0 %584 }
 0x25e   :  { %530 = vmatpush.bf16.msra.mxu1 %v635_v31  ;;  %v580_v37 = vmul.f32 %v578_v36, %v570_v62 }
 0x260   :  { %v633_v33 = vld [vmem:[#allocation5] sm:$0xff]  ;;  %v587_v39 = vadd.f32 %v585_v10, %v580_v37 }
 0x262   :  { %531 = vmatpush.bf16.msra.mxu1 %v634_v32 }
 0x266   :  { %532 = vmatpush.bf16.msra.mxu1 %v633_v33 }
 0x269   :  { %629 = vmatmul.msk.bf16.vlgmr.msra.gmra.mxu1 %vm517_vm2, %v480_v34 }
 0x2e6   :  { %v534_v0 = vpop.f32.mrf.mxu1 }
 0x2e7   :  { %v544_v1 = vmul.f32 %v542_v35, %v534_v0 }
 0x2e9   :  { %v551_v40 = vadd.f32 %v549_v38, %v544_v1 }
 0x2eb   :  { %v588_v41 = vadd.f32 %v587_v39, %v551_v40 }
 0x2ed   :  { %v589_v42 = vmax.f32 %v588_v41, 0.0 }
 0x2ee   :  { %v536_v43 = vpop.f32.mrf.mxu1 }
 0x2ef   :  { %590 = vst [vmem:[%s1021_s12] sm:$0xff] %v589_v42 }

</bundles_post_ra>
